<compile_context>
chip_gen: v6e
topology: v6e:2x2x1
jax: 0.10.0
libtpu: 0.0.40
codegen_flags: <defaults>
</compile_context>

<pallas_src>
import functools

import jax
import jax.numpy as jnp
import numpy as np
from jax import lax
from jax.experimental import pallas as pl
from jax.experimental.pallas import tpu as pltpu


# ---------------------------------------------------------------------------
# Kernel
# ---------------------------------------------------------------------------
def mlp_kernel(x_ref, w0_ref, b0_ref, wl_ref, bl_ref, wout_ref, out_ref):
    # First block: Linear(input_dim -> hidden) + ReLU.
    # (Every BatchNorm has been folded into the *following* Linear on the host.)
    h = jnp.dot(x_ref[...], w0_ref[...], preferred_element_type=jnp.float32)
    h = jnp.maximum(h + b0_ref[...], 0.0)              # f32 bias + ReLU

    num_layers = wl_ref.shape[0]

    # Hidden blocks.  The activation is the loop carry -> lives in vregs
    # (no VMEM scratch round-trip).  bf16 matmul operands, f32 accumulate.
    def body(l, h):
        hh = jnp.dot(h.astype(jnp.bfloat16), wl_ref[l],
                     preferred_element_type=jnp.float32)
        return jnp.maximum(hh + bl_ref[l], 0.0)

    h = lax.fori_loop(0, num_layers, body, h, unroll=True)

    # Final Linear(hidden -> 1), lane-dense: contract hidden so the result is
    # (1, tile_b) with batch on lanes -> unmasked, full-lane store.
    out_ref[...] = lax.dot_general(
        wout_ref[...], h.astype(jnp.bfloat16),
        dimension_numbers=(((1,), (1,)), ((), ())),
        preferred_element_type=jnp.float32)


# ---------------------------------------------------------------------------
# Wrapper
# ---------------------------------------------------------------------------
def _round_up(x, m):
    return ((x + m - 1) // m) * m


def _pick_tile(batch, tile_b):
    # Largest tile <= tile_b, but keep at least 2 grid steps when the batch
    # allows it so ("parallel",) can use both v7x TensorCores.
    half = max(128, _round_up((batch + 1) // 2, 128))
    return max(128, min(_round_up(tile_b, 128), half))


def _vmem_limit_bytes(tile_b, input_dim, hidden, num_layers):
    # Resident constant-index operands are double-buffered by the default
    # pipeline -> budget them at 2x.  Activations live in vregs, but budget the
    # f32 carry in case the compiler spills it.
    weight_b = 2 * (input_dim * hidden + num_layers * hidden * hidden + hidden)  # bf16
    bias_b = 4 * ((num_layers + 1) * hidden)                                     # f32
    x_tile_b = 2 * tile_b * input_dim                                            # bf16
    out_tile_b = 4 * tile_b                                                      # f32
    act_b = 4 * tile_b * hidden
    total = 2 * (weight_b + bias_b + x_tile_b + out_tile_b) + act_b
    # Generous headroom, but stay well under v7x's 64 MiB physical VMEM.
    return int(min(max(2 * total, 16 * 1024 * 1024), 48 * 1024 * 1024))


@functools.partial(jax.jit, static_argnames=("tile_b",))
def _mlp_pallas(x, w0, b0, wl, bl, wout_t, *, tile_b):
    batch, input_dim = x.shape
    hidden = w0.shape[1]
    num_layers = wl.shape[0]

    tb = _pick_tile(batch, tile_b)
    padded = pl.cdiv(batch, tb) * tb
    if padded != batch:
        x = jnp.pad(x, ((0, padded - batch), (0, 0)))
    x = x.astype(jnp.bfloat16)

    grid = (padded // tb,)

    out = pl.pallas_call(
        mlp_kernel,
        out_shape=jax.ShapeDtypeStruct((1, padded), jnp.float32),
        grid_spec=pltpu.PrefetchScalarGridSpec(
            num_scalar_prefetch=0,
            grid=grid,
            in_specs=[
                pl.BlockSpec((tb, input_dim), lambda i: (i, 0)),       # x tile
                # Constant index_maps -> weights/biases DMA'd once, VMEM-resident.
                pl.BlockSpec((input_dim, hidden), lambda i: (0, 0)),   # w0 (bf16)
                pl.BlockSpec((1, hidden), lambda i: (0, 0)),           # b0 (f32)
                pl.BlockSpec((num_layers, hidden, hidden),
                             lambda i: (0, 0, 0)),                     # wl stack (bf16)
                pl.BlockSpec((num_layers, 1, hidden),
                             lambda i: (0, 0, 0)),                     # bl stack (f32)
                pl.BlockSpec((1, hidden), lambda i: (0, 0)),           # wout^T (bf16)
            ],
            out_specs=pl.BlockSpec((1, tb), lambda i: (0, i)),         # lane-dense
        ),
        compiler_params=pltpu.CompilerParams(
            dimension_semantics=("parallel",),
            vmem_limit_bytes=_vmem_limit_bytes(tb, input_dim, hidden, num_layers)),
    )(x, w0, b0, wl, bl, wout_t)
    return out  # (1, padded), batch on lanes


def mlp_forward(x, packed, *, tile_b=512):
    batch = x.shape[0]
    out = _mlp_pallas(x, packed["w0"], packed["b0"], packed["wl"],
                      packed["bl"], packed["wout_t"], tile_b=tile_b)
    # (1, padded) lane-dense -> (batch, 1); add folded output bias here
    # (kept out of the kernel so the epilogue is a single lane-dense store).
    return out[0, :batch, None] + packed["bout"]


# ---------------------------------------------------------------------------
# Host-side parameter prep: BN folding + padding + bf16 cast (zero runtime cost)
# ---------------------------------------------------------------------------
def fold_and_pack_params(params, eps=1e-5, lane=128):
    def bn_scale_shift(bn):
        gamma, beta, mean, var = bn
        scale = gamma / jnp.sqrt(var + eps)
        shift = beta - mean * scale
        return scale, shift

    w0, b0 = params["w0"], params["b0"]
    wl_raw, bl_raw, bns = params["wl"], params["bl"], params["bns"]
    wout, bout = params["wout"], params["bout"]
    num_layers = len(wl_raw)

    # Fold BN_{i-1} into Linear_i; fold the last BN into the output Linear.
    wl_f, bl_f = [], []
    for i in range(num_layers):
        scale, shift = bn_scale_shift(bns[i])
        wl_f.append(scale[:, None] * wl_raw[i])
        bl_f.append(bl_raw[i] + shift @ wl_raw[i])
    scale, shift = bn_scale_shift(bns[num_layers])
    wout_f = scale[:, None] * wout            # (H, 1)
    bout_f = bout + shift @ wout              # (1,)

    hidden = w0.shape[1]
    hidden_p = _round_up(hidden, lane)        # e.g. real net: 300 -> 384
    pad_h = hidden_p - hidden

    def pad_cols(a):                          # (..., H) -> (..., Hp), zeros
        return jnp.pad(a, [(0, 0)] * (a.ndim - 1) + [(0, pad_h)])

    w0_p = pad_cols(w0)                                                   # (in, Hp)
    b0_p = pad_cols(b0[None, :])                                          # (1, Hp)
    wl_p = jnp.stack([jnp.pad(w, ((0, pad_h), (0, pad_h))) for w in wl_f])  # (L,Hp,Hp)
    bl_p = jnp.stack([pad_cols(b[None, :]) for b in bl_f])                  # (L,1,Hp)
    wout_t = pad_cols(wout_f.T)                                           # (1, Hp)

    return dict(
        w0=w0_p.astype(jnp.bfloat16),
        b0=b0_p.astype(jnp.float32),
        wl=wl_p.astype(jnp.bfloat16),
        bl=bl_p.astype(jnp.float32),
        wout_t=wout_t.astype(jnp.bfloat16),
        bout=bout_f.astype(jnp.float32),
    )


def make_params(key, input_dim, hidden_dim, layer_count):
    """Deterministic synthetic parameters (PyTorch-like init; W stored for x@W)."""
    def lin(k, fan_in, fan_out):
        bound = 1.0 / np.sqrt(fan_in)
        kw, kb = jax.random.split(k)
        w = jax.random.uniform(kw, (fan_in, fan_out), jnp.float32, -bound, bound)
        b = jax.random.uniform(kb, (fan_out,), jnp.float32, -bound, bound)
        return w, b

    def bn(k, dim):
        kg, kb2, km, kv = jax.random.split(k, 4)
        gamma = 1.0 + 0.1 * jax.random.normal(kg, (dim,), jnp.float32)
        beta = 0.1 * jax.random.normal(kb2, (dim,), jnp.float32)
        mean = 0.1 * jax.random.normal(km, (dim,), jnp.float32)
        var = jnp.abs(jax.random.normal(kv, (dim,), jnp.float32)) + 0.5
        return gamma, beta, mean, var

    k_lin0, k_bn0, k_hl, k_hbn, k_out = jax.random.split(key, 5)
    w0, b0 = lin(k_lin0, input_dim, hidden_dim)
    bns = [bn(k_bn0, hidden_dim)]
    wl, bl = [], []
    for i in range(layer_count):
        w, b = lin(jax.random.fold_in(k_hl, i), hidden_dim, hidden_dim)
        wl.append(w)
        bl.append(b)
        bns.append(bn(jax.random.fold_in(k_hbn, i), hidden_dim))
    wout, bout = lin(k_out, hidden_dim, 1)
    return dict(w0=w0, b0=b0, wl=wl, bl=bl, bns=bns, wout=wout, bout=bout)


def reference_forward(x, params, eps=1e-5):
    """Pure-JAX f32 reference with the *unfolded, unpadded* parameters."""
    def bn_apply(h, bn):
        gamma, beta, mean, var = bn
        return (h - mean) / jnp.sqrt(var + eps) * gamma + beta

    h = jnp.maximum(x @ params["w0"] + params["b0"], 0.0)
    h = bn_apply(h, params["bns"][0])
    for i, (w, b) in enumerate(zip(params["wl"], params["bl"])):
        h = jnp.maximum(h @ w + b, 0.0)
        h = bn_apply(h, params["bns"][i + 1])
    return h @ params["wout"] + params["bout"]


# ---------------------------------------------------------------------------
if __name__ == "__main__":
    # Small shapes consistent with the module (real net: 300 nodes, 10 layers;
    # hidden=96 here exercises the hidden->128 padding path).
    batch, input_dim, hidden_dim, layer_count = 256, 16, 96, 4

    key = jax.random.PRNGKey(0)
    kx, kp = jax.random.split(key)
    x = jax.random.normal(kx, (batch, input_dim), jnp.float32)

    params = make_params(kp, input_dim, hidden_dim, layer_count)
    packed = fold_and_pack_params(params)

    out = mlp_forward(x, packed, tile_b=512)
    out = jax.block_until_ready(out)

    ref = np.asarray(reference_forward(x, params))
    outn = np.asarray(out)
    assert outn.shape == (batch, 1)
    # bf16 matmul operands with f32 accumulation -> tolerance relative to the
    # output scale.
    tol = 5e-2 * max(1.0, float(np.abs(ref).max()))
    np.testing.assert_allclose(outn, ref, rtol=5e-2, atol=tol)
    print("KERNEL_OK")
</pallas_src>

<mosaic_0001>
module attributes {stable_mosaic.version = 11 : i64} {
  func.func @mlp_kernel(%arg0: i32, %arg1: memref<128x16xbf16, #tpu.memory_space<vmem>>, %arg2: memref<16x128xbf16, #tpu.memory_space<vmem>>, %arg3: memref<1x128xf32, #tpu.memory_space<vmem>>, %arg4: memref<4x128x128xbf16, #tpu.memory_space<vmem>>, %arg5: memref<4x1x128xf32, #tpu.memory_space<vmem>>, %arg6: memref<1x128xbf16, #tpu.memory_space<vmem>>, %arg7: memref<1x128xf32, #tpu.memory_space<vmem>>) attributes {dimension_semantics = [#tpu.dimension_semantics<parallel>], iteration_bounds = array<i64: 2>, scalar_prefetch = 0 : i64, scratch_operands = 0 : i64, tpu.core_type = #tpu.core_type<tc>, window_params = [{transform_indices = @transform_0, window_bounds = array<i64: 128, 16>}, {pipeline_mode = #tpu.pipeline_mode<synchronous>, transform_indices = @transform_1, window_bounds = array<i64: 16, 128>}, {pipeline_mode = #tpu.pipeline_mode<synchronous>, transform_indices = @transform_2, window_bounds = array<i64: 1, 128>}, {pipeline_mode = #tpu.pipeline_mode<synchronous>, transform_indices = @transform_3, window_bounds = array<i64: 4, 128, 128>}, {pipeline_mode = #tpu.pipeline_mode<synchronous>, transform_indices = @transform_4, window_bounds = array<i64: 4, 1, 128>}, {pipeline_mode = #tpu.pipeline_mode<synchronous>, transform_indices = @transform_5, window_bounds = array<i64: 1, 128>}, {transform_indices = @transform_6, window_bounds = array<i64: 1, 128>}]} {
    %c0 = arith.constant 0 : index
    %c0_0 = arith.constant 0 : index
    %0 = vector.load %arg1[%c0, %c0_0] : memref<128x16xbf16, #tpu.memory_space<vmem>>, vector<128x16xbf16>
    %c0_1 = arith.constant 0 : index
    %c0_2 = arith.constant 0 : index
    %1 = vector.load %arg2[%c0_1, %c0_2] : memref<16x128xbf16, #tpu.memory_space<vmem>>, vector<16x128xbf16>
    %cst = arith.constant dense<0.000000e+00> : vector<128x128xf32>
    %2 = tpu.matmul %0, %1, %cst {dimension_numbers = #tpu.dot_dimension_numbers<[1], [0], [0], [1], [0, 0, 1, 1], [], []>} : vector<128x16xbf16>, vector<16x128xbf16>, vector<128x128xf32> -> vector<128x128xf32>
    %c0_3 = arith.constant 0 : index
    %c0_4 = arith.constant 0 : index
    %3 = vector.load %arg3[%c0_3, %c0_4] : memref<1x128xf32, #tpu.memory_space<vmem>>, vector<1x128xf32>
    %4 = vector.broadcast %3 : vector<1x128xf32> to vector<128x128xf32>
    %5 = arith.addf %2, %4 : vector<128x128xf32>
    %cst_5 = arith.constant 0.000000e+00 : f32
    %6 = vector.broadcast %cst_5 : f32 to vector<128x128xf32>
    %7 = arith.maximumf %5, %6 : vector<128x128xf32>
    %c0_i32 = arith.constant 0 : i32
    %8 = arith.truncf %7 : vector<128x128xf32> to vector<128x128xbf16>
    %9 = arith.index_cast %c0_i32 : i32 to index
    %c0_6 = arith.constant 0 : index
    %c0_7 = arith.constant 0 : index
    %10 = vector.load %arg4[%9, %c0_6, %c0_7] : memref<4x128x128xbf16, #tpu.memory_space<vmem>>, vector<1x128x128xbf16>
    %11 = vector.shape_cast %10 : vector<1x128x128xbf16> to vector<128x128xbf16>
    %cst_8 = arith.constant dense<0.000000e+00> : vector<128x128xf32>
    %12 = tpu.matmul %8, %11, %cst_8 {dimension_numbers = #tpu.dot_dimension_numbers<[1], [0], [0], [1], [0, 0, 1, 1], [], []>} : vector<128x128xbf16>, vector<128x128xbf16>, vector<128x128xf32> -> vector<128x128xf32>
    %13 = arith.index_cast %c0_i32 : i32 to index
    %c0_9 = arith.constant 0 : index
    %c0_10 = arith.constant 0 : index
    %14 = vector.load %arg5[%13, %c0_9, %c0_10] : memref<4x1x128xf32, #tpu.memory_space<vmem>>, vector<1x1x128xf32>
    %15 = vector.shape_cast %14 : vector<1x1x128xf32> to vector<1x128xf32>
    %16 = vector.broadcast %15 : vector<1x128xf32> to vector<128x128xf32>
    %17 = arith.addf %12, %16 : vector<128x128xf32>
    %cst_11 = arith.constant 0.000000e+00 : f32
    %18 = vector.broadcast %cst_11 : f32 to vector<128x128xf32>
    %19 = arith.maximumf %17, %18 : vector<128x128xf32>
    %c1_i32 = arith.constant 1 : i32
    %20 = arith.truncf %19 : vector<128x128xf32> to vector<128x128xbf16>
    %21 = arith.index_cast %c1_i32 : i32 to index
    %c0_12 = arith.constant 0 : index
    %c0_13 = arith.constant 0 : index
    %22 = vector.load %arg4[%21, %c0_12, %c0_13] : memref<4x128x128xbf16, #tpu.memory_space<vmem>>, vector<1x128x128xbf16>
    %23 = vector.shape_cast %22 : vector<1x128x128xbf16> to vector<128x128xbf16>
    %cst_14 = arith.constant dense<0.000000e+00> : vector<128x128xf32>
    %24 = tpu.matmul %20, %23, %cst_14 {dimension_numbers = #tpu.dot_dimension_numbers<[1], [0], [0], [1], [0, 0, 1, 1], [], []>} : vector<128x128xbf16>, vector<128x128xbf16>, vector<128x128xf32> -> vector<128x128xf32>
    %25 = arith.index_cast %c1_i32 : i32 to index
    %c0_15 = arith.constant 0 : index
    %c0_16 = arith.constant 0 : index
    %26 = vector.load %arg5[%25, %c0_15, %c0_16] : memref<4x1x128xf32, #tpu.memory_space<vmem>>, vector<1x1x128xf32>
    %27 = vector.shape_cast %26 : vector<1x1x128xf32> to vector<1x128xf32>
    %28 = vector.broadcast %27 : vector<1x128xf32> to vector<128x128xf32>
    %29 = arith.addf %24, %28 : vector<128x128xf32>
    %cst_17 = arith.constant 0.000000e+00 : f32
    %30 = vector.broadcast %cst_17 : f32 to vector<128x128xf32>
    %31 = arith.maximumf %29, %30 : vector<128x128xf32>
    %c2_i32 = arith.constant 2 : i32
    %32 = arith.truncf %31 : vector<128x128xf32> to vector<128x128xbf16>
    %33 = arith.index_cast %c2_i32 : i32 to index
    %c0_18 = arith.constant 0 : index
    %c0_19 = arith.constant 0 : index
    %34 = vector.load %arg4[%33, %c0_18, %c0_19] : memref<4x128x128xbf16, #tpu.memory_space<vmem>>, vector<1x128x128xbf16>
    %35 = vector.shape_cast %34 : vector<1x128x128xbf16> to vector<128x128xbf16>
    %cst_20 = arith.constant dense<0.000000e+00> : vector<128x128xf32>
    %36 = tpu.matmul %32, %35, %cst_20 {dimension_numbers = #tpu.dot_dimension_numbers<[1], [0], [0], [1], [0, 0, 1, 1], [], []>} : vector<128x128xbf16>, vector<128x128xbf16>, vector<128x128xf32> -> vector<128x128xf32>
    %37 = arith.index_cast %c2_i32 : i32 to index
    %c0_21 = arith.constant 0 : index
    %c0_22 = arith.constant 0 : index
    %38 = vector.load %arg5[%37, %c0_21, %c0_22] : memref<4x1x128xf32, #tpu.memory_space<vmem>>, vector<1x1x128xf32>
    %39 = vector.shape_cast %38 : vector<1x1x128xf32> to vector<1x128xf32>
    %40 = vector.broadcast %39 : vector<1x128xf32> to vector<128x128xf32>
    %41 = arith.addf %36, %40 : vector<128x128xf32>
    %cst_23 = arith.constant 0.000000e+00 : f32
    %42 = vector.broadcast %cst_23 : f32 to vector<128x128xf32>
    %43 = arith.maximumf %41, %42 : vector<128x128xf32>
    %c3_i32 = arith.constant 3 : i32
    %44 = arith.truncf %43 : vector<128x128xf32> to vector<128x128xbf16>
    %45 = arith.index_cast %c3_i32 : i32 to index
    %c0_24 = arith.constant 0 : index
    %c0_25 = arith.constant 0 : index
    %46 = vector.load %arg4[%45, %c0_24, %c0_25] : memref<4x128x128xbf16, #tpu.memory_space<vmem>>, vector<1x128x128xbf16>
    %47 = vector.shape_cast %46 : vector<1x128x128xbf16> to vector<128x128xbf16>
    %cst_26 = arith.constant dense<0.000000e+00> : vector<128x128xf32>
    %48 = tpu.matmul %44, %47, %cst_26 {dimension_numbers = #tpu.dot_dimension_numbers<[1], [0], [0], [1], [0, 0, 1, 1], [], []>} : vector<128x128xbf16>, vector<128x128xbf16>, vector<128x128xf32> -> vector<128x128xf32>
    %49 = arith.index_cast %c3_i32 : i32 to index
    %c0_27 = arith.constant 0 : index
    %c0_28 = arith.constant 0 : index
    %50 = vector.load %arg5[%49, %c0_27, %c0_28] : memref<4x1x128xf32, #tpu.memory_space<vmem>>, vector<1x1x128xf32>
    %51 = vector.shape_cast %50 : vector<1x1x128xf32> to vector<1x128xf32>
    %52 = vector.broadcast %51 : vector<1x128xf32> to vector<128x128xf32>
    %53 = arith.addf %48, %52 : vector<128x128xf32>
    %cst_29 = arith.constant 0.000000e+00 : f32
    %54 = vector.broadcast %cst_29 : f32 to vector<128x128xf32>
    %55 = arith.maximumf %53, %54 : vector<128x128xf32>
    %c4_i32 = arith.constant 4 : i32
    %c0_30 = arith.constant 0 : index
    %c0_31 = arith.constant 0 : index
    %56 = vector.load %arg6[%c0_30, %c0_31] : memref<1x128xbf16, #tpu.memory_space<vmem>>, vector<1x128xbf16>
    %57 = arith.truncf %55 : vector<128x128xf32> to vector<128x128xbf16>
    %cst_32 = arith.constant dense<0.000000e+00> : vector<1x128xf32>
    %58 = tpu.matmul %56, %57, %cst_32 {dimension_numbers = #tpu.dot_dimension_numbers<[1], [1], [0], [0], [0, 0, 1, 0], [], []>} : vector<1x128xbf16>, vector<128x128xbf16>, vector<1x128xf32> -> vector<1x128xf32>
    %c0_33 = arith.constant 0 : index
    %c0_34 = arith.constant 0 : index
    %59 = vector.load %arg7[%c0_33, %c0_34] : memref<1x128xf32, #tpu.memory_space<vmem>>, vector<1x128xf32>
    tpu.vector_store %arg7[%c0_33, %c0_34], %58 {strides = array<i32>} : memref<1x128xf32, #tpu.memory_space<vmem>>, vector<1x128xf32>,
    return
  }
  func.func @transform_0(%arg0: i32) -> (i32, i32) {
    %c0_i32 = arith.constant 0 : i32
    %c0_i32_0 = arith.constant 0 : i32
    return %arg0, %c0_i32 : i32, i32
  }
  func.func @transform_1(%arg0: i32) -> (i32, i32) {
    %c0_i32 = arith.constant 0 : i32
    %c0_i32_0 = arith.constant 0 : i32
    %c0_i32_1 = arith.constant 0 : i32
    return %c0_i32, %c0_i32_0 : i32, i32
  }
  func.func @transform_2(%arg0: i32) -> (i32, i32) {
    %c0_i32 = arith.constant 0 : i32
    %c0_i32_0 = arith.constant 0 : i32
    %c0_i32_1 = arith.constant 0 : i32
    return %c0_i32, %c0_i32_0 : i32, i32
  }
  func.func @transform_3(%arg0: i32) -> (i32, i32, i32) {
    %c0_i32 = arith.constant 0 : i32
    %c0_i32_0 = arith.constant 0 : i32
    %c0_i32_1 = arith.constant 0 : i32
    %c0_i32_2 = arith.constant 0 : i32
    return %c0_i32, %c0_i32_0, %c0_i32_1 : i32, i32, i32
  }
  func.func @transform_4(%arg0: i32) -> (i32, i32, i32) {
    %c0_i32 = arith.constant 0 : i32
    %c0_i32_0 = arith.constant 0 : i32
    %c0_i32_1 = arith.constant 0 : i32
    %c0_i32_2 = arith.constant 0 : i32
    return %c0_i32, %c0_i32_0, %c0_i32_1 : i32, i32, i32
  }
  func.func @transform_5(%arg0: i32) -> (i32, i32) {
    %c0_i32 = arith.constant 0 : i32
    %c0_i32_0 = arith.constant 0 : i32
    %c0_i32_1 = arith.constant 0 : i32
    return %c0_i32, %c0_i32_0 : i32, i32
  }
  func.func @transform_6(%arg0: i32) -> (i32, i32) {
    %c0_i32 = arith.constant 0 : i32
    %c0_i32_0 = arith.constant 0 : i32
    return %c0_i32, %arg0 : i32, i32
  }
}

</mosaic_0001>

<bundles_post_ra>
// kernel: _mlp_pallas.1
= control target key start
LH: loop header
LB: loop body
LE: loop exit
PB: predicated region body
PF: predicated region fallthrough
CT: control target
= control target key end

     0   :  { %11 = vsyncpa [#allocation3], 0  ;;  %s2110_s0 = inlined_call_operand.vmem [shape: bf16[256,16], index: 0, kind: input, shape index: {}]   ;;  %s2111_s1 = inlined_call_operand.vmem [shape: bf16[16,128], index: 1, kind: input, shape index: {}]   ;;  %s2112_s2 = inlined_call_operand.vmem [shape: f32[1,128], index: 2, kind: input, shape index: {}]   ;;  %s2113_s3 = inlined_call_operand.hbm [shape: bf16[4,128,128], index: 3, kind: input, shape index: {}]   ;;  %s2114_s4 = inlined_call_operand.vmem [shape: f32[4,1,128], index: 4, kind: input, shape index: {}]   ;;  %s2115_s5 = inlined_call_operand.vmem [shape: bf16[1,128], index: 5, kind: input, shape index: {}]   ;;  %s2116_s6 = inlined_call_operand.hbm [shape: f32[1,256], index: 6, kind: output, shape index: {}]  }
   0x1   :  { %12 = vsyncpa [#allocation4], 0 }
   0x2   :  { %14 = vsyncpa [#allocation4 + $0x1], 0  ;;  %s1924_s21 = smov 0   ;;  %s1926_s22 = smov 0  }
   0x3   :  { %s1928_s23 = smov 0   ;;  %s1930_s24 = smov 0  }
   0x4 LB: > { %s1945_s25 = sadd.s32 4294967295, %s1881_s24   ;;  %s1380_s26 = sadd.s32 4294967294, %s1881_s24   ;;  %s1881_s24 = sphi %s1930_s24, %s2124_s24   ;;  %s1877_s23 = sphi %s1928_s23, %s2123_s23   ;;  %s1873_s22 = sphi %s1926_s22, %s2122_s22   ;;  %s1869_s21 = sphi %s1924_s21, %s2121_s21  }
   0x5   : > { %s1949_s27 = sadd.s32 1, %s1881_s24   ;;  %s158_s28 = sadd.s32 1, %s1877_s23 }
   0x6   : > { %s155_s29 = ssub.s32 %s1881_s24, %s1949_s27  ;;  %p168_p0 = scmp.ne.s32.totalorder %s1877_s23, %s1873_s22 }
   0x7   : > { %p156_p1 = scmp.eq.s32.totalorder %s155_s29, 0  ;;  %p169_p2 = scmp.eq.s32.totalorder %s1945_s25, 1 }
   0x8   : > { %p174_p3 = scmp.ne.s32.totalorder %s1873_s22, %s1869_s21  ;;  %p175_p4 = scmp.eq.s32.totalorder %s1380_s26, 1 }
   0x9   : > { %s1960_s30 = scalar_select %p156_p1, %s1877_s23, %s158_s28  }
   0xa   : > { %p1962_p5 = por %p169_p2, %p168_p0  ;;  %p1966_p6 = por %p175_p4, %p174_p3 }
   0xb   : > { %p1381_p7 = scmp.ge.s32.totalorder %s1881_s24, 1  ;;  %p182_p8 = scmp.lt.s32.totalorder %s1881_s24, 3 }
   0xc   : > { %s2118_s8 = scalar_select %p1966_p6, 1, 0 }
   0xd   : > { %p1710_p9 = scmp.eq.s32.totalorder %s1945_s25, 0  ;;  %p1973_p10 = pnand %p1381_p7, %p182_p8 }
   0xe   : > { %s1883_s10 = smov [#allocation2]  }
   0xf   : > { %s200_s11 = sshll.u32 %s1883_s10, 4  ;;  %p1702_p11 = pneg %p1973_p10  ;;  %s201_s11 = int_to_ptr.vmem [resolvable:$true] %s200_s11 }
  0x10   : > { %s1802_s12 = scalar_lea.vmem %s201_s11, 4096  ;;  %p1810_p3 = scmp.lt.s32.totalorder %s201_s11, %s201_s11 }
  0x11   : > { %p1703_p12 = pnand %p1710_p9, %p1702_p11  ;;  %p1803_p0 = scmp.ne.s32.totalorder %s201_s11, %s1802_s12 }
  0x12   : > { %p1811_p4 = scmp.lt.s32.totalorder %s1802_s12, %s1802_s12 }
  0x13   : > { %p1793_p13 = pneg %p1703_p12 }
  0x14   : > { %p1812_p6 = por %p1811_p4, %p1810_p3 }
  0x15   : > { %p1805_p1 = pnand %p1803_p0, %p1793_p13 }
  0x17   : > { %p1806_p2 = pneg %p1805_p1 }
  0x19   : > { %p1813_p7 = pnand %p1812_p6, %p1806_p2 }
  0x1b   : > { %1816 = shalt.err (!%p1813_p7)
}
  0x1c   : > { %s1884_s13 = smov 64   ;;  %s1885_s14 = smov 4  }
  0x1d   : > { %1705 = dma.hbm_to_vmem [thread:$0]  (!%p1703_p12), %s2113_s3, 4096, %s201_s11, [#allocation3], %s1884_s13, %s1884_s13, %s1885_s14  }
  0x1e   : > { %231 = sbr.rel (%p1973_p10) target bundleno = 1368 (0x558), region = 44 }
  0x23   : > { %1860 = dma.done.wait (%p1710_p9), [#allocation3], 4096  }
  0x24   : > { %1862 = vsyncadd (%p1710_p9), [#allocation3], 4294963200  ;;  %s1991_s17 = sshll.u32 %s1945_s25, 4  ;;  %v1750_v0 = vld [vmem:[%s2111_s1] sm:$0xff]   ;;  %vm338_vm0 = vcmask 130048   ;;  %v1759_v5 = vld [vmem:[#allocation2 + $0x38] sm:$0xff]  }
  0x25   : > { %p261_p6 = scmp.lt.s32.totalorder %s1991_s17, 31  ;;  %1530 = vmatprep.subr.bf16.mxu1 %v1750_v0  ;;  %v1760_v6 = vld [vmem:[#allocation2 + $0x30] sm:$0xff]   ;;  %1548 = vmatprep.subr.bf16.mxu0 %v1759_v5  ;;  %v1761_v8 = vld [vmem:[#allocation2 + $0x28] sm:$0xff]   ;;  %v1762_v9 = vld [vmem:[#allocation2 + $0x20] sm:$0xff]   ;;  %vm1887_vm1 = vmmov 0   ;;  %s2071_s11 = scalar_lea.hbm %s2116_s6, %s1991_s17 }
  0x26   : > { %1531 = vmatpush3.bf16.msra.mxu1 %v1750_v0  ;;  %1549 = vmatpush3.bf16.msra.mxu0 %v1759_v5  ;;  %v1763_v12 = vld [vmem:[#allocation2 + $0x18] sm:$0xff]   ;;  %v1764_v14 = vld [vmem:[#allocation2 + $0x10] sm:$0xff]   ;;  %v1765_v15 = vld [vmem:[#allocation2 + $0x8] sm:$0xff]   ;;  %s1888_s14 = smov [#allocation5]  }
  0x27   : > { %s262_s18 = scalar_select %p261_p6, %s1991_s17, 31  ;;  %1550 = vmatprep.subr.bf16.mxu0 %v1760_v6  ;;  %v1766_v16 = vld [vmem:[#allocation2] sm:$0xff]   ;;  %v1767_v17 = vld [vmem:[#allocation2 + $0x78] sm:$0xff]   ;;  %v1768_v36 = vld [vmem:[#allocation2 + $0x70] sm:$0xff]  }
  0x28   : > { %v2022_v20 = vld [vmem:[%s2112_s2] ss:$0 sm:$0xff]  ;;  %v1769_v44 = vld [vmem:[#allocation2 + $0x68] sm:$0xff]   ;;  %v1771_v60 = vld [vmem:[#allocation2 + $0x58] sm:$0xff]   ;;  %s1821_s15 = sshll.u32 %s1888_s14, 4  ;;  %s1822_s15 = int_to_ptr.vmem [resolvable:$false] %s1821_s15 }
  0x29   : > { %s1387_s19 = sshll.u32 %s262_s18, 2  ;;  %v1770_v52 = vld [vmem:[#allocation2 + $0x60] sm:$0xff]   ;;  %s1823_s16 = scalar_lea.vmem %s1822_s15, 32 }
  0x2a   : > { %s1998_s28 = scalar_lea.vmem %s2110_s0, %s1387_s19  ;;  %1551 = vmatpush3.bf16.msra.mxu0 %v1760_v6 }
  0x2b   : > { %v1751_v1 = vld [vmem:[%s1998_s28] sm:$0xff]   ;;  %v1752_v2 = vld [vmem:[%s1998_s28 + $0x8] sm:$0xff]   ;;  %v1753_v3 = vld [vmem:[%s1998_s28 + $0x10] sm:$0xff]   ;;  %1552 = vmatprep.subr.bf16.mxu0 %v1761_v8 }
  0x2c   : > { %1532 = vmatprep.mubr.msk.bf16.mxu1 %vm338_vm0, %v1751_v1  ;;  %v1754_v4 = vld [vmem:[%s1998_s28 + $0x18] sm:$0xff]   ;;  %v1755_v7 = vld [vmem:[%s1998_s28 + $0x20] sm:$0xff]   ;;  %v1756_v10 = vld [vmem:[%s1998_s28 + $0x28] sm:$0xff]  }
  0x2d   : > { %1533 = vmatmul.mubr.msk.bf16.vlgmr.msra.gmra.mxu1 %vm338_vm0, %v1752_v2  ;;  %v1757_v11 = vld [vmem:[%s1998_s28 + $0x30] sm:$0xff]   ;;  %v1758_v13 = vld [vmem:[%s1998_s28 + $0x38] sm:$0xff]   ;;  %s258_s28 = sand.u32 1, %s1873_s22  }
  0x2e   : > { %1536 = vmatprep.mubr.msk.bf16.mxu1 %vm338_vm0, %v1753_v3  ;;  %1553 = vmatpush3.bf16.msra.mxu0 %v1761_v8  ;;  %s259_s29 = scalar_lea.vmem [#allocation5], %s258_s28  ;;  %s1301_s12 = scalar_lea.sflag [#allocation4], %s258_s28 }
  0x2f   : > { %1554 = vmatprep.subr.bf16.mxu0 %v1762_v9  ;;  %s1313_s9 = sshll.u32 %s259_s29, 4  ;;  %s2065_s9 = int_to_ptr.vmem [resolvable:$true] %s1313_s9 }
  0x30   : > { %s1817_s13 = scalar_lea.vmem %s2065_s9, 16  ;;  %p1824_p11 = scmp.lt.s32.totalorder %s2065_s9, %s1822_s15 }
  0x31   : > { %p1818_p8 = scmp.ne.s32.totalorder %s2065_s9, %s1817_s13  ;;  %p1825_p12 = scmp.lt.s32.totalorder %s1823_s16, %s1817_s13 }
  0x32   : > { %1555 = vmatpush3.bf16.msra.mxu0 %v1762_v9 }
  0x33   : > { %1556 = vmatprep.subr.bf16.mxu0 %v1763_v12  ;;  %p1819_p9 = pnand %p1818_p8, %p1962_p5  ;;  %p1826_p13 = por %p1825_p12, %p1824_p11 }
  0x35   : > { %1537 = vmatmul.mubr.msk.bf16.gmra.mxu1 %vm338_vm0, %v1754_v4  ;;  %p1820_p10 = pneg %p1819_p9 }
  0x36   : > { %1540 = vmatprep.mubr.msk.bf16.mxu1 %vm338_vm0, %v1755_v7  ;;  %1557 = vmatpush3.bf16.msra.mxu0 %v1763_v12 }
  0x37   : > { %1558 = vmatprep.subr.bf16.mxu0 %v1764_v14  ;;  %p1827_p0 = pnand %p1826_p13, %p1820_p10 }
  0x3a   : > { %1559 = vmatpush3.bf16.msra.mxu0 %v1764_v14 }
  0x3b   : > { %1560 = vmatprep.subr.bf16.mxu0 %v1765_v15 }
  0x3d   : > { %1541 = vmatmul.mubr.msk.bf16.gmra.mxu1 %vm338_vm0, %v1756_v10 }
  0x3e   : > { %1544 = vmatprep.mubr.msk.bf16.mxu1 %vm338_vm0, %v1757_v11  ;;  %1561 = vmatpush3.bf16.msra.mxu0 %v1765_v15  ;;  %v1772_v15 = vld [vmem:[#allocation2 + $0x50] sm:$0xff]  }
  0x3f   : > { %1562 = vmatprep.subr.bf16.mxu0 %v1766_v16 }
  0x42   : > { %1563 = vmatpush3.bf16.msra.mxu0 %v1766_v16  ;;  %v1773_v16 = vld [vmem:[#allocation2 + $0x48] sm:$0xff]  }
  0x43   : > { %1580 = vmatprep.subr.bf16.mxu0 %v1767_v17 }
  0x45   : > { %1545 = vmatmul.mubr.msk.bf16.gmra.mxu1 %vm338_vm0, %v1758_v13 }
  0xed   : > { %v1534_v18 = vpop.f32.mrf.mxu1 }
  0xee   : > { %v406_v24 = vadd.f32 %v1534_v18, %v2022_v20  ;;  %v1775_v18 = vld [vmem:[#allocation2 + $0xb8] sm:$0xff]  }
  0xef   : > { %v397_v19 = vpop.f32.mrf.mxu1  ;;  %1612 = vmatprep.subr.bf16.mxu1 %v1775_v18 }
  0xf0   : > { %v398_v22 = vadd.f32 %v2022_v20, %v397_v19  ;;  %v462_v31 = vmax.f32 %v406_v24, 0.0  ;;  %v1776_v19 = vld [vmem:[#allocation2 + $0xb0] sm:$0xff]   ;;  %1613 = vmatpush3.bf16.msra.mxu1 %v1775_v18  ;;  %v1782_v18 = vld [vmem:[#allocation2 + $0x80] sm:$0xff]  }
  0xf1   : > { %v1535_v21 = vpop.f32.mrf.mxu1  ;;  %1614 = vmatprep.subr.bf16.mxu1 %v1776_v19 }
  0xf2   : > { %v409_v23 = vadd.f32 %v1535_v21, %v2022_v20  ;;  %v460_v29 = vmax.f32 %v398_v22, 0.0  ;;  %v1778_v21 = vld [vmem:[#allocation2 + $0xa0] sm:$0xff]   ;;  %v1779_v22 = vld [vmem:[#allocation2 + $0x98] sm:$0xff]  }
  0xf3   : > { %v400_v25 = vpop.f32.mrf.mxu1 }
  0xf4   : > { %v401_v26 = vadd.f32 %v2022_v20, %v400_v25  ;;  %v463_v27 = vmax.f32 %v409_v23, 0.0  ;;  %1615 = vmatpush3.bf16.msra.mxu1 %v1776_v19  ;;  %v1406_v25 = vld [vmem:[%s2114_s4] ss:$0 sm:$0xff]  ;;  %v1783_v19 = vld [vmem:[#allocation2 + $0xf8] sm:$0xff]  }
  0xf5   : > { %v1538_v28 = vpop.f32.mrf.mxu1 }
  0xf6   : > { %v461_v30 = vmax.f32 %v401_v26, 0.0  ;;  %v477_v34 = vpack.c.bf16 %v463_v27, %v462_v31  ;;  %v422_v39 = vadd.f32 %v1538_v28, %v2022_v20 }
  0xf7   : > { %v413_v32 = vpop.f32.mrf.mxu1 }
  0xf8   : > { %v476_v33 = vpack.c.bf16 %v461_v30, %v460_v29  ;;  %v414_v37 = vadd.f32 %v2022_v20, %v413_v32  ;;  %v466_v47 = vmax.f32 %v422_v39, 0.0 }
  0xf9   : > { %v1539_v35 = vpop.f32.mrf.mxu1 }
  0xfa   : > { %v425_v38 = vadd.f32 %v1539_v35, %v2022_v20  ;;  %1564 = vmatprep.mubr.bf16.mxu0 %v476_v33  ;;  %v464_v45 = vmax.f32 %v414_v37, 0.0 }
  0xfb   : > { %v416_v40 = vpop.f32.mrf.mxu1  ;;  %1565 = vmatmul.mubr.bf16.vlgmr.msra.gmra.mxu0 %v477_v34 }
  0xfc   : > { %v417_v41 = vadd.f32 %v2022_v20, %v416_v40  ;;  %1581 = vmatpush3.bf16.msra.mxu0 %v1767_v17  ;;  %v467_v42 = vmax.f32 %v425_v38, 0.0  ;;  %v1774_v17 = vld [vmem:[#allocation2 + $0x40] sm:$0xff]  }
  0xfd   : > { %v1542_v43 = vpop.f32.mrf.mxu1  ;;  %1582 = vmatprep.subr.bf16.mxu0 %v1768_v36 }
  0xfe   : > { %v465_v46 = vmax.f32 %v417_v41, 0.0  ;;  %v479_v50 = vpack.c.bf16 %v467_v42, %v466_v47  ;;  %v438_v55 = vadd.f32 %v1542_v43, %v2022_v20 }
  0xff   : > { %v429_v48 = vpop.f32.mrf.mxu1 }
 0x100   : > { %v478_v49 = vpack.c.bf16 %v465_v46, %v464_v45  ;;  %1583 = vmatpush3.bf16.msra.mxu0 %v1768_v36  ;;  %v430_v53 = vadd.f32 %v2022_v20, %v429_v48  ;;  %v470_v63 = vmax.f32 %v438_v55, 0.0 }
 0x101   : > { %v1543_v51 = vpop.f32.mrf.mxu1  ;;  %1584 = vmatprep.subr.bf16.mxu0 %v1769_v44 }
 0x102   : > { %v441_v54 = vadd.f32 %v1543_v51, %v2022_v20  ;;  %1568 = vmatprep.mubr.bf16.mxu0 %v478_v49  ;;  %v468_v61 = vmax.f32 %v430_v53, 0.0 }
 0x103   : > { %v432_v56 = vpop.f32.mrf.mxu1  ;;  %1569 = vmatmul.mubr.bf16.gmra.mxu0 %v479_v50 }
 0x104   : > { %v433_v57 = vadd.f32 %v2022_v20, %v432_v56  ;;  %1585 = vmatpush3.bf16.msra.mxu0 %v1769_v44  ;;  %v471_v58 = vmax.f32 %v441_v54, 0.0 }
 0x105   : > { %v1546_v59 = vpop.f32.mrf.mxu1  ;;  %1586 = vmatprep.subr.bf16.mxu0 %v1770_v52 }
 0x106   : > { %v469_v62 = vmax.f32 %v433_v57, 0.0  ;;  %v481_v2 = vpack.c.bf16 %v471_v58, %v470_v63  ;;  %v454_v6 = vadd.f32 %v1546_v59, %v2022_v20 }
 0x107   : > { %v445_v0 = vpop.f32.mrf.mxu1 }
 0x108   : > { %v480_v1 = vpack.c.bf16 %v469_v62, %v468_v61  ;;  %1587 = vmatpush3.bf16.msra.mxu0 %v1770_v52  ;;  %v446_v4 = vadd.f32 %v2022_v20, %v445_v0  ;;  %v474_v12 = vmax.f32 %v454_v6, 0.0 }
 0x109   : > { %v1547_v3 = vpop.f32.mrf.mxu1  ;;  %1588 = vmatprep.subr.bf16.mxu0 %v1771_v60 }
 0x10a   : > { %v457_v5 = vadd.f32 %v1547_v3, %v2022_v20  ;;  %1572 = vmatprep.mubr.bf16.mxu0 %v480_v1  ;;  %v472_v10 = vmax.f32 %v446_v4, 0.0 }
 0x10b   : > { %v448_v7 = vpop.f32.mrf.mxu1  ;;  %1573 = vmatmul.mubr.bf16.gmra.mxu0 %v481_v2 }
 0x10c   : > { %v449_v8 = vadd.f32 %v2022_v20, %v448_v7  ;;  %1589 = vmatpush3.bf16.msra.mxu0 %v1771_v60  ;;  %v475_v9 = vmax.f32 %v457_v5, 0.0  ;;  %v1777_v20 = vld [vmem:[#allocation2 + $0xa8] sm:$0xff]  }
 0x10d   : > { %1590 = vmatprep.subr.bf16.mxu0 %v1772_v15  ;;  %1616 = vmatprep.subr.bf16.mxu1 %v1777_v20 }
 0x10e   : > { %v473_v11 = vmax.f32 %v449_v8, 0.0  ;;  %v483_v14 = vpack.c.bf16 %v475_v9, %v474_v12  ;;  %1617 = vmatpush3.bf16.msra.mxu1 %v1777_v20  ;;  %v1784_v20 = vld [vmem:[#allocation2 + $0xf0] sm:$0xff]  }
 0x10f   : > { %1618 = vmatprep.subr.bf16.mxu1 %v1778_v21 }
 0x110   : > { %v482_v13 = vpack.c.bf16 %v473_v11, %v472_v10  ;;  %1591 = vmatpush3.bf16.msra.mxu0 %v1772_v15 }
 0x111   : > { %1592 = vmatprep.subr.bf16.mxu0 %v1773_v16 }
 0x112   : > { %1576 = vmatprep.mubr.bf16.mxu0 %v482_v13  ;;  %1619 = vmatpush3.bf16.msra.mxu1 %v1778_v21  ;;  %v1785_v21 = vld [vmem:[#allocation2 + $0xe8] sm:$0xff]  }
 0x113   : > { %1577 = vmatmul.mubr.bf16.gmra.mxu0 %v483_v14  ;;  %1620 = vmatprep.subr.bf16.mxu1 %v1779_v22 }
 0x114   : > { %1593 = vmatpush3.bf16.msra.mxu0 %v1773_v16  ;;  %v1780_v16 = vld [vmem:[#allocation2 + $0x90] sm:$0xff]  }
 0x115   : > { %1594 = vmatprep.subr.bf16.mxu0 %v1774_v17 }
 0x116   : > { %1621 = vmatpush3.bf16.msra.mxu1 %v1779_v22  ;;  %v1786_v22 = vld [vmem:[#allocation2 + $0xe0] sm:$0xff]  }
 0x117   : > { %1622 = vmatprep.subr.bf16.mxu1 %v1780_v16 }
 0x118   : > { %1595 = vmatpush3.bf16.msra.mxu0 %v1774_v17  ;;  %v1781_v17 = vld [vmem:[#allocation2 + $0x88] sm:$0xff]  }
 0x119   : > { %1644 = vmatprep.subr.bf16.mxu0 %v1783_v19 }
 0x11a   : > { %1623 = vmatpush3.bf16.msra.mxu1 %v1780_v16 }
 0x11b   : > { %1624 = vmatprep.subr.bf16.mxu1 %v1781_v17 }
 0x11e   : > { %1625 = vmatpush3.bf16.msra.mxu1 %v1781_v17  ;;  %v1788_v17 = vld [vmem:[#allocation2 + $0xd0] sm:$0xff]  }
 0x11f   : > { %1626 = vmatprep.subr.bf16.mxu1 %v1782_v18 }
 0x122   : > { %1627 = vmatpush3.bf16.msra.mxu1 %v1782_v18  ;;  %v1789_v18 = vld [vmem:[#allocation2 + $0xc8] sm:$0xff]  }
 0x1bb   : > { %v1566_v23 = vpop.f32.mrf.mxu0 }
 0x1bc   : > { %v598_v29 = vadd.f32 %v1566_v23, %v1406_v25  ;;  %v1787_v23 = vld [vmem:[#allocation2 + $0xd8] sm:$0xff]  }
 0x1bd   : > { %v589_v24 = vpop.f32.mrf.mxu0 }
 0x1be   : > { %v590_v27 = vadd.f32 %v1406_v25, %v589_v24  ;;  %v654_v36 = vmax.f32 %v598_v29, 0.0 }
 0x1bf   : > { %v1567_v26 = vpop.f32.mrf.mxu0 }
 0x1c0   : > { %v601_v28 = vadd.f32 %v1567_v26, %v1406_v25  ;;  %v652_v34 = vmax.f32 %v590_v27, 0.0  ;;  %v1416_v26 = vld [vmem:[%s2114_s4 + $0x1] ss:$0 sm:$0xff] }
 0x1c1   : > { %v592_v30 = vpop.f32.mrf.mxu0 }
 0x1c2   : > { %v593_v31 = vadd.f32 %v1406_v25, %v592_v30  ;;  %v655_v32 = vmax.f32 %v601_v28, 0.0 }
 0x1c3   : > { %v1570_v33 = vpop.f32.mrf.mxu0 }
 0x1c4   : > { %v653_v35 = vmax.f32 %v593_v31, 0.0  ;;  %v669_v39 = vpack.c.bf16 %v655_v32, %v654_v36  ;;  %v614_v43 = vadd.f32 %v1570_v33, %v1406_v25 }
 0x1c5   : > { %v605_v37 = vpop.f32.mrf.mxu0 }
 0x1c6   : > { %v668_v38 = vpack.c.bf16 %v653_v35, %v652_v34  ;;  %v606_v41 = vadd.f32 %v1406_v25, %v605_v37  ;;  %v658_v50 = vmax.f32 %v614_v43, 0.0 }
 0x1c7   : > { %v1571_v40 = vpop.f32.mrf.mxu0 }
 0x1c8   : > { %v617_v42 = vadd.f32 %v1571_v40, %v1406_v25  ;;  %1596 = vmatprep.mubr.bf16.mxu0 %v668_v38  ;;  %v656_v48 = vmax.f32 %v606_v41, 0.0 }
 0x1c9   : > { %v608_v44 = vpop.f32.mrf.mxu0  ;;  %1597 = vmatmul.mubr.bf16.vlgmr.msra.gmra.mxu0 %v669_v39 }
 0x1ca   : > { %v609_v45 = vadd.f32 %v1406_v25, %v608_v44  ;;  %v659_v46 = vmax.f32 %v617_v42, 0.0  ;;  %1645 = vmatpush3.bf16.msra.mxu0 %v1783_v19  ;;  %v1790_v19 = vld [vmem:[#allocation2 + $0xc0] sm:$0xff]  }
 0x1cb   : > { %v1574_v47 = vpop.f32.mrf.mxu0  ;;  %1646 = vmatprep.subr.bf16.mxu0 %v1784_v20 }
 0x1cc   : > { %v657_v49 = vmax.f32 %v609_v45, 0.0  ;;  %v671_v53 = vpack.c.bf16 %v659_v46, %v658_v50  ;;  %v630_v57 = vadd.f32 %v1574_v47, %v1406_v25 }
 0x1cd   : > { %v621_v51 = vpop.f32.mrf.mxu0 }
 0x1ce   : > { %v670_v52 = vpack.c.bf16 %v657_v49, %v656_v48  ;;  %v622_v55 = vadd.f32 %v1406_v25, %v621_v51  ;;  %v662_v0 = vmax.f32 %v630_v57, 0.0  ;;  %1647 = vmatpush3.bf16.msra.mxu0 %v1784_v20 }
 0x1cf   : > { %v1575_v54 = vpop.f32.mrf.mxu0  ;;  %1648 = vmatprep.subr.bf16.mxu0 %v1785_v21 }
 0x1d0   : > { %v633_v56 = vadd.f32 %v1575_v54, %v1406_v25  ;;  %1600 = vmatprep.mubr.bf16.mxu0 %v670_v52  ;;  %v660_v62 = vmax.f32 %v622_v55, 0.0 }
 0x1d1   : > { %v624_v58 = vpop.f32.mrf.mxu0  ;;  %1601 = vmatmul.mubr.bf16.gmra.mxu0 %v671_v53 }
 0x1d2   : > { %v625_v59 = vadd.f32 %v1406_v25, %v624_v58  ;;  %v663_v60 = vmax.f32 %v633_v56, 0.0  ;;  %1649 = vmatpush3.bf16.msra.mxu0 %v1785_v21 }
 0x1d3   : > { %v1578_v61 = vpop.f32.mrf.mxu0  ;;  %1650 = vmatprep.subr.bf16.mxu0 %v1786_v22 }
 0x1d4   : > { %v661_v63 = vmax.f32 %v625_v59, 0.0  ;;  %v673_v3 = vpack.c.bf16 %v663_v60, %v662_v0  ;;  %v646_v7 = vadd.f32 %v1578_v61, %v1406_v25 }
 0x1d5   : > { %v637_v1 = vpop.f32.mrf.mxu0 }
 0x1d6   : > { %v672_v2 = vpack.c.bf16 %v661_v63, %v660_v62  ;;  %v638_v5 = vadd.f32 %v1406_v25, %v637_v1  ;;  %v666_v13 = vmax.f32 %v646_v7, 0.0  ;;  %1651 = vmatpush3.bf16.msra.mxu0 %v1786_v22  ;;  %v1426_v22 = vld [vmem:[%s2114_s4 + $0x2] ss:$0 sm:$0xff] }
 0x1d7   : > { %v1579_v4 = vpop.f32.mrf.mxu0  ;;  %1652 = vmatprep.subr.bf16.mxu0 %v1787_v23 }
 0x1d8   : > { %v649_v6 = vadd.f32 %v1579_v4, %v1406_v25  ;;  %1604 = vmatprep.mubr.bf16.mxu0 %v672_v2  ;;  %v664_v11 = vmax.f32 %v638_v5, 0.0 }
 0x1d9   : > { %v640_v8 = vpop.f32.mrf.mxu0  ;;  %1605 = vmatmul.mubr.bf16.gmra.mxu0 %v673_v3 }
 0x1da   : > { %v641_v9 = vadd.f32 %v1406_v25, %v640_v8  ;;  %v667_v10 = vmax.f32 %v649_v6, 0.0  ;;  %1653 = vmatpush3.bf16.msra.mxu0 %v1787_v23 }
 0x1db   : > { %1654 = vmatprep.subr.bf16.mxu0 %v1788_v17 }
 0x1dc   : > { %v665_v12 = vmax.f32 %v641_v9, 0.0  ;;  %v675_v15 = vpack.c.bf16 %v667_v10, %v666_v13 }
 0x1de   : > { %v674_v14 = vpack.c.bf16 %v665_v12, %v664_v11  ;;  %1655 = vmatpush3.bf16.msra.mxu0 %v1788_v17 }
 0x1df   : > { %1656 = vmatprep.subr.bf16.mxu0 %v1789_v18 }
 0x1e0   : > { %1608 = vmatprep.mubr.bf16.mxu0 %v674_v14 }
 0x1e1   : > { %1609 = vmatmul.mubr.bf16.gmra.mxu0 %v675_v15 }
 0x1e2   : > { %1657 = vmatpush3.bf16.msra.mxu0 %v1789_v18 }
 0x1e3   : > { %1658 = vmatprep.subr.bf16.mxu0 %v1790_v19 }
 0x1e6   : > { %1659 = vmatpush3.bf16.msra.mxu0 %v1790_v19 }
 0x289   : > { %v1598_v24 = vpop.f32.mrf.mxu0 }
 0x28a   : > { %v792_v30 = vadd.f32 %v1598_v24, %v1416_v26 }
 0x28b   : > { %v783_v25 = vpop.f32.mrf.mxu0 }
 0x28c   : > { %v784_v28 = vadd.f32 %v1416_v26, %v783_v25  ;;  %v848_v37 = vmax.f32 %v792_v30, 0.0 }
 0x28d   : > { %v1599_v27 = vpop.f32.mrf.mxu0 }
 0x28e   : > { %v795_v29 = vadd.f32 %v1599_v27, %v1416_v26  ;;  %v846_v35 = vmax.f32 %v784_v28, 0.0 }
 0x28f   : > { %v786_v31 = vpop.f32.mrf.mxu0 }
 0x290   : > { %v787_v32 = vadd.f32 %v1416_v26, %v786_v31  ;;  %v849_v33 = vmax.f32 %v795_v29, 0.0 }
 0x291   : > { %v1602_v34 = vpop.f32.mrf.mxu0 }
 0x292   : > { %v847_v36 = vmax.f32 %v787_v32, 0.0  ;;  %v863_v40 = vpack.c.bf16 %v849_v33, %v848_v37  ;;  %v808_v44 = vadd.f32 %v1602_v34, %v1416_v26 }
 0x293   : > { %v799_v38 = vpop.f32.mrf.mxu0 }
 0x294   : > { %v862_v39 = vpack.c.bf16 %v847_v36, %v846_v35  ;;  %v800_v42 = vadd.f32 %v1416_v26, %v799_v38  ;;  %v852_v51 = vmax.f32 %v808_v44, 0.0 }
 0x295   : > { %v1603_v41 = vpop.f32.mrf.mxu0 }
 0x296   : > { %v811_v43 = vadd.f32 %v1603_v41, %v1416_v26  ;;  %1628 = vmatprep.mubr.bf16.mxu1 %v862_v39  ;;  %v850_v49 = vmax.f32 %v800_v42, 0.0 }
 0x297   : > { %v802_v45 = vpop.f32.mrf.mxu0  ;;  %1629 = vmatmul.mubr.bf16.vlgmr.msra.gmra.mxu1 %v863_v40 }
 0x298   : > { %v803_v46 = vadd.f32 %v1416_v26, %v802_v45  ;;  %v853_v47 = vmax.f32 %v811_v43, 0.0 }
 0x299   : > { %v1606_v48 = vpop.f32.mrf.mxu0 }
 0x29a   : > { %v851_v50 = vmax.f32 %v803_v46, 0.0  ;;  %v865_v54 = vpack.c.bf16 %v853_v47, %v852_v51  ;;  %v824_v58 = vadd.f32 %v1606_v48, %v1416_v26 }
 0x29b   : > { %v815_v52 = vpop.f32.mrf.mxu0 }
 0x29c   : > { %v864_v53 = vpack.c.bf16 %v851_v50, %v850_v49  ;;  %v816_v56 = vadd.f32 %v1416_v26, %v815_v52  ;;  %v856_v1 = vmax.f32 %v824_v58, 0.0 }
 0x29d   : > { %v1607_v55 = vpop.f32.mrf.mxu0 }
 0x29e   : > { %v827_v57 = vadd.f32 %v1607_v55, %v1416_v26  ;;  %1632 = vmatprep.mubr.bf16.mxu1 %v864_v53  ;;  %v854_v63 = vmax.f32 %v816_v56, 0.0 }
 0x29f   : > { %v818_v59 = vpop.f32.mrf.mxu0  ;;  %1633 = vmatmul.mubr.bf16.gmra.mxu1 %v865_v54 }
 0x2a0   : > { %v819_v60 = vadd.f32 %v1416_v26, %v818_v59  ;;  %v857_v61 = vmax.f32 %v827_v57, 0.0 }
 0x2a1   : > { %v1610_v62 = vpop.f32.mrf.mxu0 }
 0x2a2   : > { %v855_v0 = vmax.f32 %v819_v60, 0.0  ;;  %v867_v4 = vpack.c.bf16 %v857_v61, %v856_v1  ;;  %v840_v8 = vadd.f32 %v1610_v62, %v1416_v26 }
 0x2a3   : > { %v831_v2 = vpop.f32.mrf.mxu0 }
 0x2a4   : > { %v866_v3 = vpack.c.bf16 %v855_v0, %v854_v63  ;;  %v832_v6 = vadd.f32 %v1416_v26, %v831_v2  ;;  %v860_v14 = vmax.f32 %v840_v8, 0.0 }
 0x2a5   : > { %v1611_v5 = vpop.f32.mrf.mxu0 }
 0x2a6   : > { %v843_v7 = vadd.f32 %v1611_v5, %v1416_v26  ;;  %1636 = vmatprep.mubr.bf16.mxu1 %v866_v3  ;;  %v858_v12 = vmax.f32 %v832_v6, 0.0 }
 0x2a7   : > { %v834_v9 = vpop.f32.mrf.mxu0  ;;  %1637 = vmatmul.mubr.bf16.gmra.mxu1 %v867_v4 }
 0x2a8   : > { %v835_v10 = vadd.f32 %v1416_v26, %v834_v9  ;;  %v861_v11 = vmax.f32 %v843_v7, 0.0 }
 0x2aa   : > { %v859_v13 = vmax.f32 %v835_v10, 0.0  ;;  %v869_v16 = vpack.c.bf16 %v861_v11, %v860_v14 }
 0x2ac   : > { %v868_v15 = vpack.c.bf16 %v859_v13, %v858_v12  ;;  %v1886_v13 = vmov 0.0  }
 0x2ad   : > { %1676 = vmatprep.subr.bf16.mxu1 %v1886_v13 }
 0x2ae   : > { %1640 = vmatprep.mubr.bf16.mxu1 %v868_v15  ;;  %v1436_v15 = vld [vmem:[%s2114_s4 + $0x3] ss:$0 sm:$0xff] }
 0x2af   : > { %1641 = vmatmul.mubr.bf16.gmra.mxu1 %v869_v16 }
 0x2b0   : > { %1692 = vmatprep.mubr.msk.bf16.mxu1 %vm1887_vm1, %v1886_v13 }
 0x357   : > { %v1630_v20 = vpop.f32.mrf.mxu1 }
 0x358   : > { %v986_v26 = vadd.f32 %v1630_v20, %v1426_v22 }
 0x359   : > { %v977_v21 = vpop.f32.mrf.mxu1 }
 0x35a   : > { %v978_v24 = vadd.f32 %v1426_v22, %v977_v21  ;;  %v1042_v33 = vmax.f32 %v986_v26, 0.0 }
 0x35b   : > { %v1631_v23 = vpop.f32.mrf.mxu1 }
 0x35c   : > { %v989_v25 = vadd.f32 %v1631_v23, %v1426_v22  ;;  %v1040_v31 = vmax.f32 %v978_v24, 0.0 }
 0x35d   : > { %v980_v27 = vpop.f32.mrf.mxu1 }
 0x35e   : > { %v981_v28 = vadd.f32 %v1426_v22, %v980_v27  ;;  %v1043_v29 = vmax.f32 %v989_v25, 0.0 }
 0x35f   : > { %v1634_v30 = vpop.f32.mrf.mxu1 }
 0x360   : > { %v1041_v32 = vmax.f32 %v981_v28, 0.0  ;;  %v1057_v36 = vpack.c.bf16 %v1043_v29, %v1042_v33  ;;  %v1002_v40 = vadd.f32 %v1634_v30, %v1426_v22 }
 0x361   : > { %v993_v34 = vpop.f32.mrf.mxu1 }
 0x362   : > { %v1056_v35 = vpack.c.bf16 %v1041_v32, %v1040_v31  ;;  %v994_v38 = vadd.f32 %v1426_v22, %v993_v34  ;;  %v1046_v47 = vmax.f32 %v1002_v40, 0.0 }
 0x363   : > { %v1635_v37 = vpop.f32.mrf.mxu1 }
 0x364   : > { %v1005_v39 = vadd.f32 %v1635_v37, %v1426_v22  ;;  %1660 = vmatprep.mubr.bf16.mxu0 %v1056_v35  ;;  %v1044_v45 = vmax.f32 %v994_v38, 0.0 }
 0x365   : > { %v996_v41 = vpop.f32.mrf.mxu1  ;;  %1661 = vmatmul.mubr.bf16.vlgmr.msra.gmra.mxu0 %v1057_v36 }
 0x366   : > { %v997_v42 = vadd.f32 %v1426_v22, %v996_v41  ;;  %v1047_v43 = vmax.f32 %v1005_v39, 0.0 }
 0x367   : > { %v1638_v44 = vpop.f32.mrf.mxu1 }
 0x368   : > { %v1045_v46 = vmax.f32 %v997_v42, 0.0  ;;  %v1059_v50 = vpack.c.bf16 %v1047_v43, %v1046_v47  ;;  %v1018_v54 = vadd.f32 %v1638_v44, %v1426_v22 }
 0x369   : > { %v1009_v48 = vpop.f32.mrf.mxu1 }
 0x36a   : > { %v1058_v49 = vpack.c.bf16 %v1045_v46, %v1044_v45  ;;  %v1010_v52 = vadd.f32 %v1426_v22, %v1009_v48  ;;  %v1050_v61 = vmax.f32 %v1018_v54, 0.0 }
 0x36b   : > { %v1639_v51 = vpop.f32.mrf.mxu1 }
 0x36c   : > { %v1021_v53 = vadd.f32 %v1639_v51, %v1426_v22  ;;  %1664 = vmatprep.mubr.bf16.mxu0 %v1058_v49  ;;  %v1048_v59 = vmax.f32 %v1010_v52, 0.0 }
 0x36d   : > { %v1012_v55 = vpop.f32.mrf.mxu1  ;;  %1665 = vmatmul.mubr.bf16.gmra.mxu0 %v1059_v50 }
 0x36e   : > { %v1013_v56 = vadd.f32 %v1426_v22, %v1012_v55  ;;  %v1051_v57 = vmax.f32 %v1021_v53, 0.0 }
 0x36f   : > { %v1642_v58 = vpop.f32.mrf.mxu1 }
 0x370   : > { %v1049_v60 = vmax.f32 %v1013_v56, 0.0  ;;  %v1061_v0 = vpack.c.bf16 %v1051_v57, %v1050_v61  ;;  %v1034_v4 = vadd.f32 %v1642_v58, %v1426_v22 }
 0x371   : > { %v1025_v62 = vpop.f32.mrf.mxu1 }
 0x372   : > { %v1060_v63 = vpack.c.bf16 %v1049_v60, %v1048_v59  ;;  %v1026_v2 = vadd.f32 %v1426_v22, %v1025_v62  ;;  %v1054_v10 = vmax.f32 %v1034_v4, 0.0 }
 0x373   : > { %v1643_v1 = vpop.f32.mrf.mxu1 }
 0x374   : > { %v1037_v3 = vadd.f32 %v1643_v1, %v1426_v22  ;;  %1668 = vmatprep.mubr.bf16.mxu0 %v1060_v63  ;;  %v1052_v8 = vmax.f32 %v1026_v2, 0.0 }
 0x375   : > { %v1028_v5 = vpop.f32.mrf.mxu1  ;;  %1669 = vmatmul.mubr.bf16.gmra.mxu0 %v1061_v0 }
 0x376   : > { %v1029_v6 = vadd.f32 %v1426_v22, %v1028_v5  ;;  %v1055_v7 = vmax.f32 %v1037_v3, 0.0 }
 0x378   : > { %v1053_v9 = vmax.f32 %v1029_v6, 0.0  ;;  %v1063_v12 = vpack.c.bf16 %v1055_v7, %v1054_v10  ;;  %v1250_v7 = vld [vmem:[%s2115_s5] sm:$0x1] }
 0x37a   : > { %v1062_v11 = vpack.c.bf16 %v1053_v9, %v1052_v8 }
 0x37c   : > { %1672 = vmatprep.mubr.bf16.mxu0 %v1062_v11 }
 0x37d   : > { %1673 = vmatmul.mubr.bf16.gmra.mxu0 %v1063_v12 }
 0x425   : > { %v1662_v14 = vpop.f32.mrf.mxu0 }
 0x426   : > { %v1180_v17 = vadd.f32 %v1662_v14, %v1436_v15 }
 0x427   : > { %v1171_v16 = vpop.f32.mrf.mxu0 }
 0x428   : > { %v1172_v19 = vadd.f32 %v1436_v15, %v1171_v16  ;;  %v1236_v22 = vmax.f32 %v1180_v17, 0.0 }
 0x429   : > { %v1663_v18 = vpop.f32.mrf.mxu0 }
 0x42a   : > { %v1183_v20 = vadd.f32 %v1663_v18, %v1436_v15  ;;  %v1234_v26 = vmax.f32 %v1172_v19, 0.0 }
 0x42b   : > { %v1174_v21 = vpop.f32.mrf.mxu0 }
 0x42c   : > { %v1237_v23 = vmax.f32 %v1183_v20, 0.0  ;;  %v1175_v24 = vadd.f32 %v1436_v15, %v1174_v21 }
 0x42d   : > { %v1666_v25 = vpop.f32.mrf.mxu0 }
 0x42e   : > { %v1252_v27 = vpack.c.bf16 %v1237_v23, %v1236_v22  ;;  %v1235_v28 = vmax.f32 %v1175_v24, 0.0  ;;  %v1196_v62 = vadd.f32 %v1666_v25, %v1436_v15 }
 0x42f   : > { %v1187_v29 = vpop.f32.mrf.mxu0 }
 0x430   : > { %v1251_v30 = vpack.c.bf16 %v1235_v28, %v1234_v26  ;;  %v1240_v0 = vmax.f32 %v1196_v62, 0.0  ;;  %v1188_v3 = vadd.f32 %v1436_v15, %v1187_v29 }
 0x431   : > { %v1667_v31 = vpop.f32.mrf.mxu0 }
 0x432   : > { %v1199_v60 = vadd.f32 %v1667_v31, %v1436_v15  ;;  %v1238_v5 = vmax.f32 %v1188_v3, 0.0 }
 0x433   : > { %v1190_v32 = vpop.f32.mrf.mxu0 }
 0x434   : > { %v1241_v63 = vmax.f32 %v1199_v60, 0.0  ;;  %v1191_v2 = vadd.f32 %v1436_v15, %v1190_v32 }
 0x435   : > { %v1670_v33 = vpop.f32.mrf.mxu0 }
 0x436   : > { %v1212_v52 = vadd.f32 %v1670_v33, %v1436_v15  ;;  %v1254_v1 = vpack.c.bf16 %v1241_v63, %v1240_v0  ;;  %v1239_v4 = vmax.f32 %v1191_v2, 0.0 }
 0x437   : > { %v1203_v34 = vpop.f32.mrf.mxu0 }
 0x438   : > { %v1244_v54 = vmax.f32 %v1212_v52, 0.0  ;;  %v1204_v57 = vadd.f32 %v1436_v15, %v1203_v34  ;;  %v1253_v6 = vpack.c.bf16 %v1239_v4, %v1238_v5 }
 0x439   : > { %v1671_v35 = vpop.f32.mrf.mxu0 }
 0x43a   : > { %v1215_v50 = vadd.f32 %v1671_v35, %v1436_v15  ;;  %v1242_v59 = vmax.f32 %v1204_v57, 0.0 }
 0x43b   : > { %v1206_v36 = vpop.f32.mrf.mxu0 }
 0x43c   : > { %v1245_v53 = vmax.f32 %v1215_v50, 0.0  ;;  %v1207_v56 = vadd.f32 %v1436_v15, %v1206_v36 }
 0x43d   : > { %v1674_v37 = vpop.f32.mrf.mxu0 }
 0x43e   : > { %v1228_v39 = vadd.f32 %v1674_v37, %v1436_v15  ;;  %v1256_v55 = vpack.c.bf16 %v1245_v53, %v1244_v54  ;;  %v1243_v58 = vmax.f32 %v1207_v56, 0.0 }
 0x43f   : > { %v1219_v38 = vpop.f32.mrf.mxu0 }
 0x440   : > { %v1248_v43 = vmax.f32 %v1228_v39, 0.0  ;;  %v1220_v47 = vadd.f32 %v1436_v15, %v1219_v38  ;;  %v1255_v61 = vpack.c.bf16 %v1243_v58, %v1242_v59 }
 0x441   : > { %v1675_v40 = vpop.f32.mrf.mxu0 }
 0x442   : > { %v1231_v41 = vadd.f32 %v1675_v40, %v1436_v15  ;;  %v1246_v49 = vmax.f32 %v1220_v47, 0.0 }
 0x443   : > { %v1222_v42 = vpop.f32.mrf.mxu0 }
 0x444   : > { %v1249_v44 = vmax.f32 %v1231_v41, 0.0  ;;  %v1223_v46 = vadd.f32 %v1436_v15, %v1222_v42 }
 0x446   : > { %v1258_v45 = vpack.c.bf16 %v1249_v44, %v1248_v43  ;;  %v1247_v48 = vmax.f32 %v1223_v46, 0.0 }
 0x448   : > { %1677 = vmatpush3.bf16.xpose.msra.mxu1 %v1258_v45  ;;  %v1257_v51 = vpack.c.bf16 %v1247_v48, %v1246_v49 }
 0x449   : > { %1678 = vmatprep.subr.bf16.mxu1 %v1886_v13 }
 0x450   : > { %1679 = vmatpush3.bf16.xpose.msra.mxu1 %v1257_v51 }
 0x451   : > { %1680 = vmatprep.subr.bf16.mxu1 %v1886_v13 }
 0x458   : > { %1681 = vmatpush3.bf16.xpose.msra.mxu1 %v1256_v55 }
 0x459   : > { %1682 = vmatprep.subr.bf16.mxu1 %v1886_v13 }
 0x460   : > { %1683 = vmatpush3.bf16.xpose.msra.mxu1 %v1255_v61 }
 0x461   : > { %1684 = vmatprep.subr.bf16.mxu1 %v1886_v13 }
 0x468   : > { %1685 = vmatpush3.bf16.xpose.msra.mxu1 %v1254_v1 }
 0x469   : > { %1686 = vmatprep.subr.bf16.mxu1 %v1886_v13 }
 0x470   : > { %1687 = vmatpush3.bf16.xpose.msra.mxu1 %v1253_v6 }
 0x471   : > { %1688 = vmatprep.subr.bf16.mxu1 %v1886_v13 }
 0x478   : > { %1689 = vmatpush3.bf16.xpose.msra.mxu1 %v1252_v27 }
 0x479   : > { %1690 = vmatprep.subr.bf16.mxu1 %v1886_v13 }
 0x480   : > { %1691 = vmatpush3.bf16.xpose.msra.mxu1 %v1251_v30 }
 0x487   : > { %1693 = vmatmul.mubr.bf16.vlgmr.msra.gmra.mxu1 %v1250_v7 }
 0x547   : > { %v1293_v8 = vpop.f32.mrf.mxu1 }
 0x548   : > { %1299 = vst [vmem:[%s259_s29] sm:$0x1] %v1293_v8 }
 0x549   : > { %v1694_v9 = vpop.f32.mrf.mxu1 }
 0x54a   : > { %1830 = shalt.err (!%p1827_p0)
}
 0x54b   : > { %s1831_s17 = scalar_lea.hbm %s2071_s11, 16  ;;  %s1835_s20 = scalar_lea.hbm %s2116_s6, 32 }
 0x54c   : > { %p1832_p1 = scmp.ne.s32.totalorder %s2071_s11, %s1831_s17  ;;  %p1836_p4 = scmp.lt.s32.totalorder %s2071_s11, %s2116_s6 }
 0x54d   : > { %p1837_p7 = scmp.lt.s32.totalorder %s1835_s20, %s1831_s17 }
 0x54e   : > { %p1833_p2 = pnand %p1832_p1, %p1962_p5 }
 0x54f   : > { %p1838_p6 = por %p1837_p7, %p1836_p4 }
 0x550   : > { %p1834_p3 = pneg %p1833_p2 }
 0x552   : > { %p1839_p8 = pnand %p1838_p6, %p1834_p3 }
 0x554   : > { %1842 = shalt.err (!%p1839_p8)
}
 0x555   : > { %1700 = dma.vmem_to_hbm [thread:$0]  (%p1962_p5), %s2065_s9, 16, %s2071_s11, %s1301_s12   ;;  %v1296_v10 = vpop.f32.mrf.mxu1 }
 0x557   : > { %v1695_v11 = vpop.f32.mrf.mxu1 }
 0x558 PF: > { %p1712_p9 = scmp.ge.s32.totalorder %s1881_s24, 2  ;;  %s1325_s29 = sand.u32 1, %s1869_s21  }
 0x559   : > { %p2120_p10 = scmp.ne.s32.totalorder %s2118_s8, 0  ;;  %s1326_s25 = scalar_lea.sflag [#allocation4], %s1325_s29 }
 0x55b   : > { %p1707_p11 = pnand %p1712_p9, %p2120_p10 }
 0x55d   : > { %p1708_p12 = pneg %p1707_p11 }
 0x55f   : > { %1864 = dma.done.wait (%p1708_p12), %s1326_s25, 16  }
 0x560   : > { %1866 = vsyncadd (%p1708_p12), %s1326_s25, 4294967280  ;;  %p17_p5 = scmp.ge.s32.totalorder %s1949_s27, 4   ;;  %s2121_s21 = smov %s1873_s22 }
 0x561   : > { %s2122_s22 = smov %s1877_s23  ;;  %s2123_s23 = smov %s1960_s30 }
 0x562   : > { %s2124_s24 = smov %s1949_s27  ;;  %19 = sbr.rel (!%p17_p5) target bundleno = 4 (0x4), region = 90 }
 0x567   :  { %1330 = vsyncpa [#allocation3], 1 }
 0x568   :  { %1332 = vsyncpa [#allocation3 + $0x1], 1 }
 0x569   :  { %1333 = vsyncpa [#allocation4], 1 }
 0x56a   :  { %1335 = vsyncpa [#allocation4 + $0x1], 1 }

</bundles_post_ra>
